<compile_context>
chip_gen: v5e
topology: v5e:2x2
jax: 0.10.0
libtpu: 0.0.40
codegen_flags: <defaults>
</compile_context>

<pallas_src>
import jax
import jax.numpy as jnp
from jax import lax
from jax.experimental import pallas as pl
from jax.experimental.pallas import tpu as pltpu


def _make_pool_kernel(Cin, Cout, TH, Wo):
    """3x3 stride-2 conv as one K=9*Cin MXU matmul + folded BN + ReLU."""
    KH = KW = 3
    L = TH * (Wo + 1)          # flat spatial extent of one output row tile

    def kernel(x_ref, w_ref, b_ref, o_ref, slab_ref):
        # x_ref   : (1, 1, 4*Cin, (TH+2)*(Wo+1)) parity planes, channels-first,
        #           spatial flattened (lane-dense), 2 halo rows at the bottom
        # w_ref   : (Cout, 9*Cin)  per-tap weights, BN scale folded in
        # b_ref   : (Cout, 1)      folded conv-bias + BN shift (f32)
        # o_ref   : (1, 1, Cout, TH*(Wo+1))  flat padded output tile
        # slab_ref: (9*Cin, TH*(Wo+1)) VMEM scratch holding the stacked taps
        for kh in range(KH):
            for kw in range(KW):
                p = (kh % 2) * 2 + (kw % 2)             # parity plane index
                off = (kh // 2) * (Wo + 1) + (kw // 2)  # flat window start
                t = kh * KW + kw
                slab_ref[t * Cin:(t + 1) * Cin, :] = (
                    x_ref[0, 0, p * Cin:(p + 1) * Cin, off:off + L])
        # one (Cout, 9*Cin) x (9*Cin, L) matmul, f32 accumulation on the MXU
        acc = lax.dot_general(
            w_ref[...], slab_ref[...],
            dimension_numbers=(((1,), (0,)), ((), ())),
            preferred_element_type=jnp.float32)
        y = jnp.maximum(acc + b_ref[...], 0.0)
        o_ref[0, 0] = y.astype(o_ref.dtype)

    return kernel


@jax.jit
def pool_forward(x_nchw, w_hwio, conv_bias, gamma, beta,
                 running_mean, running_var, eps=1e-5):
    N, Cin, H, W = x_nchw.shape
    KH, KW, _, Cout = w_hwio.shape
    assert (KH, KW) == (3, 3), "Pool uses a fixed 3x3 stride-2 pad-1 conv"
    Ho = (H - 1) // 2 + 1
    Wo = (W - 1) // 2 + 1
    dtype = x_nchw.dtype

    # ---- choose an output-row tile TH so per-step VMEM stays bounded -------
    th_max = max(1, min(Ho, 8192 // (Wo + 1)))
    nt = -(-Ho // th_max)                 # cdiv
    TH = -(-Ho // nt)                     # rebalance to minimize padded rows
    HoPad = nt * TH
    L = TH * (Wo + 1)
    LB = (TH + 2) * (Wo + 1)

    # ---- single fused layout pass: pad + stride-2 parity split, CH-first ---
    # Parity plane (ph, pw) holds padded pixels at (2a+ph, 2b+pw); every conv
    # tap is then a contiguous flat window of length TH*(Wo+1) of one plane.
    Hp = 2 * (HoPad + 2)
    Wp = 2 * (Wo + 1)
    xp = jnp.pad(x_nchw, ((0, 0), (0, 0), (1, Hp - 1 - H), (1, Wp - 1 - W)))
    xr = xp.reshape(N, Cin, HoPad + 2, 2, Wo + 1, 2)
    xr = jnp.transpose(xr, (0, 3, 5, 1, 2, 4))    # (N, 2, 2, Cin, HoPad+2, Wo+1)
    xr = xr.reshape(N, 4 * Cin, HoPad + 2, Wo + 1)
    # per-row-tile blocks with a duplicated 2-row halo, spatial flattened
    if nt == 1:
        xt = xr[:, None]
    else:
        xt = jnp.stack(
            [xr[:, :, t * TH: t * TH + TH + 2, :] for t in range(nt)], axis=1)
    xt = xt.reshape(N, nt, 4 * Cin, LB)

    # ---- fold conv bias + eval-mode BatchNorm; fold scale into the weights -
    scale = (gamma / jnp.sqrt(running_var + eps)).astype(jnp.float32)
    bias = (beta + scale * (conv_bias - running_mean)).astype(jnp.float32)
    w_eff = jnp.transpose(w_hwio.astype(jnp.float32), (3, 0, 1, 2))   # (Cout,3,3,Cin)
    w_eff = (w_eff * scale[:, None, None, None]).reshape(Cout, KH * KW * Cin)
    w_eff = w_eff.astype(dtype)
    bias2d = bias.reshape(Cout, 1)

    kernel = _make_pool_kernel(Cin, Cout, TH, Wo)

    itemsize = jnp.dtype(dtype).itemsize
    cost = pl.CostEstimate(
        flops=2 * 9 * Cin * Cout * N * Ho * Wo,
        transcendentals=0,
        bytes_accessed=(N * nt * 4 * Cin * LB + Cout * KH * KW * Cin
                        + N * nt * Cout * L) * itemsize + Cout * 4)

    out = pl.pallas_call(
        kernel,
        out_shape=jax.ShapeDtypeStruct((N, nt, Cout, L), dtype),
        grid_spec=pltpu.PrefetchScalarGridSpec(
            num_scalar_prefetch=0,
            grid=(N, nt),
            in_specs=[
                pl.BlockSpec((1, 1, 4 * Cin, LB), lambda n, t: (n, t, 0, 0)),
                pl.BlockSpec((Cout, KH * KW * Cin), lambda n, t: (0, 0)),
                pl.BlockSpec((Cout, 1), lambda n, t: (0, 0)),
            ],
            out_specs=pl.BlockSpec((1, 1, Cout, L), lambda n, t: (n, t, 0, 0)),
            scratch_shapes=[pltpu.VMEM((KH * KW * Cin, L), dtype)],
        ),
        compiler_params=pltpu.CompilerParams(
            dimension_semantics=("parallel", "parallel")),
        cost_estimate=cost,
    )(xt, w_eff, bias2d)

    # trailing-dim split is free; one small crop pass drops the junk column
    # (and padded rows) and restores NCHW
    out = out.reshape(N, nt, Cout, TH, Wo + 1)
    out = jnp.transpose(out, (0, 2, 1, 3, 4)).reshape(N, Cout, HoPad, Wo + 1)
    return out[:, :, :Ho, :Wo]


def _reference(x, w_hwio, b, gamma, beta, mean, var, eps=1e-5):
    w_oihw = jnp.transpose(w_hwio, (3, 2, 0, 1))
    y = lax.conv_general_dilated(
        x, w_oihw, window_strides=(2, 2), padding=((1, 1), (1, 1)),
        dimension_numbers=('NCHW', 'OIHW', 'NCHW'))
    y = y + b.reshape(1, -1, 1, 1)
    y = (gamma.reshape(1, -1, 1, 1) * (y - mean.reshape(1, -1, 1, 1))
         / jnp.sqrt(var.reshape(1, -1, 1, 1) + eps) + beta.reshape(1, -1, 1, 1))
    return jnp.maximum(y, 0.0)


if __name__ == "__main__":
    # small shapes consistent with Pool(in_p=4, out_p=8, mode='2d')
    N, Cin, H, W = 2, 4, 16, 16
    Cout = 8

    key = jax.random.PRNGKey(0)
    kx, kw, kb, kg, kbt, km, kv = jax.random.split(key, 7)

    x = jax.random.normal(kx, (N, Cin, H, W), dtype=jnp.float32)

    # deterministic synthetic parameters (shapes from the module's __init__)
    w_hwio = 0.1 * jax.random.normal(kw, (3, 3, Cin, Cout), dtype=jnp.float32)
    conv_bias = 0.1 * jax.random.normal(kb, (Cout,), dtype=jnp.float32)
    gamma = 1.0 + 0.1 * jax.random.normal(kg, (Cout,), dtype=jnp.float32)
    beta = 0.1 * jax.random.normal(kbt, (Cout,), dtype=jnp.float32)
    running_mean = 0.1 * jax.random.normal(km, (Cout,), dtype=jnp.float32)
    running_var = jax.random.uniform(kv, (Cout,), minval=0.5, maxval=1.5,
                                     dtype=jnp.float32)

    y = pool_forward(x, w_hwio, conv_bias, gamma, beta,
                     running_mean, running_var)
    y = jax.block_until_ready(y)

    y_ref = _reference(x, w_hwio, conv_bias, gamma, beta,
                       running_mean, running_var)
    assert y.shape == (N, Cout, H // 2, W // 2), y.shape
    assert jnp.allclose(y, y_ref, atol=1e-4, rtol=1e-4), \
        float(jnp.max(jnp.abs(y - y_ref)))

    print("KERNEL_OK")
</pallas_src>

<mosaic_0001>
module attributes {stable_mosaic.version = 11 : i64} {
  func.func @kernel(%arg0: i32, %arg1: i32, %arg2: memref<1x1x16x90xf32, #tpu.memory_space<vmem>>, %arg3: memref<8x36xf32, #tpu.memory_space<vmem>>, %arg4: memref<8x1xf32, #tpu.memory_space<vmem>>, %arg5: memref<1x1x8x72xf32, #tpu.memory_space<vmem>>, %arg6: memref<36x72xf32, #tpu.memory_space<vmem>>) attributes {dimension_semantics = [#tpu.dimension_semantics<parallel>, #tpu.dimension_semantics<parallel>], iteration_bounds = array<i64: 2, 1>, scalar_prefetch = 0 : i64, scratch_operands = 1 : i64, tpu.core_type = #tpu.core_type<tc>, window_params = [{transform_indices = @transform_0, window_bounds = array<i64: 1, 1, 16, 90>}, {pipeline_mode = #tpu.pipeline_mode<synchronous>, transform_indices = @transform_1, window_bounds = array<i64: 8, 36>}, {pipeline_mode = #tpu.pipeline_mode<synchronous>, transform_indices = @transform_2, window_bounds = array<i64: 8, 1>}, {transform_indices = @transform_3, window_bounds = array<i64: 1, 1, 8, 72>}]} {
    %c0 = arith.constant 0 : index
    %c0_0 = arith.constant 0 : index
    %c0_1 = arith.constant 0 : index
    %c0_2 = arith.constant 0 : index
    %0 = vector.load %arg2[%c0, %c0_0, %c0_1, %c0_2] : memref<1x1x16x90xf32, #tpu.memory_space<vmem>>, vector<1x1x4x72xf32>
    %1 = vector.shape_cast %0 : vector<1x1x4x72xf32> to vector<4x72xf32>
    %c0_3 = arith.constant 0 : index
    %c0_4 = arith.constant 0 : index
    %2 = vector.load %arg6[%c0_3, %c0_4] : memref<36x72xf32, #tpu.memory_space<vmem>>, vector<4x72xf32>
    tpu.vector_store %arg6[%c0_3, %c0_4], %1 {strides = array<i32>} : memref<36x72xf32, #tpu.memory_space<vmem>>, vector<4x72xf32>,
    %c0_5 = arith.constant 0 : index
    %c0_6 = arith.constant 0 : index
    %c4 = arith.constant 4 : index
    %c0_7 = arith.constant 0 : index
    %3 = vector.load %arg2[%c0_5, %c0_6, %c4, %c0_7] : memref<1x1x16x90xf32, #tpu.memory_space<vmem>>, vector<1x1x4x72xf32>
    %4 = vector.shape_cast %3 : vector<1x1x4x72xf32> to vector<4x72xf32>
    %c4_8 = arith.constant 4 : index
    %c0_9 = arith.constant 0 : index
    %5 = vector.load %arg6[%c4_8, %c0_9] : memref<36x72xf32, #tpu.memory_space<vmem>>, vector<4x72xf32>
    tpu.vector_store %arg6[%c4_8, %c0_9], %4 {strides = array<i32>} : memref<36x72xf32, #tpu.memory_space<vmem>>, vector<4x72xf32>,
    %c0_10 = arith.constant 0 : index
    %c0_11 = arith.constant 0 : index
    %c0_12 = arith.constant 0 : index
    %c1 = arith.constant 1 : index
    %6 = vector.load %arg2[%c0_10, %c0_11, %c0_12, %c1] : memref<1x1x16x90xf32, #tpu.memory_space<vmem>>, vector<1x1x4x72xf32>
    %7 = vector.shape_cast %6 : vector<1x1x4x72xf32> to vector<4x72xf32>
    %c8 = arith.constant 8 : index
    %c0_13 = arith.constant 0 : index
    %8 = vector.load %arg6[%c8, %c0_13] : memref<36x72xf32, #tpu.memory_space<vmem>>, vector<4x72xf32>
    tpu.vector_store %arg6[%c8, %c0_13], %7 {strides = array<i32>} : memref<36x72xf32, #tpu.memory_space<vmem>>, vector<4x72xf32>,
    %c0_14 = arith.constant 0 : index
    %c0_15 = arith.constant 0 : index
    %c8_16 = arith.constant 8 : index
    %c0_17 = arith.constant 0 : index
    %9 = vector.load %arg2[%c0_14, %c0_15, %c8_16, %c0_17] : memref<1x1x16x90xf32, #tpu.memory_space<vmem>>, vector<1x1x4x72xf32>
    %10 = vector.shape_cast %9 : vector<1x1x4x72xf32> to vector<4x72xf32>
    %c12 = arith.constant 12 : index
    %c0_18 = arith.constant 0 : index
    %11 = vector.load %arg6[%c12, %c0_18] : memref<36x72xf32, #tpu.memory_space<vmem>>, vector<4x72xf32>
    tpu.vector_store %arg6[%c12, %c0_18], %10 {strides = array<i32>} : memref<36x72xf32, #tpu.memory_space<vmem>>, vector<4x72xf32>,
    %c0_19 = arith.constant 0 : index
    %c0_20 = arith.constant 0 : index
    %c12_21 = arith.constant 12 : index
    %c0_22 = arith.constant 0 : index
    %12 = vector.load %arg2[%c0_19, %c0_20, %c12_21, %c0_22] : memref<1x1x16x90xf32, #tpu.memory_space<vmem>>, vector<1x1x4x72xf32>
    %13 = vector.shape_cast %12 : vector<1x1x4x72xf32> to vector<4x72xf32>
    %c16 = arith.constant 16 : index
    %c0_23 = arith.constant 0 : index
    %14 = vector.load %arg6[%c16, %c0_23] : memref<36x72xf32, #tpu.memory_space<vmem>>, vector<4x72xf32>
    tpu.vector_store %arg6[%c16, %c0_23], %13 {strides = array<i32>} : memref<36x72xf32, #tpu.memory_space<vmem>>, vector<4x72xf32>,
    %c0_24 = arith.constant 0 : index
    %c0_25 = arith.constant 0 : index
    %c8_26 = arith.constant 8 : index
    %c1_27 = arith.constant 1 : index
    %15 = vector.load %arg2[%c0_24, %c0_25, %c8_26, %c1_27] : memref<1x1x16x90xf32, #tpu.memory_space<vmem>>, vector<1x1x4x72xf32>
    %16 = vector.shape_cast %15 : vector<1x1x4x72xf32> to vector<4x72xf32>
    %c20 = arith.constant 20 : index
    %c0_28 = arith.constant 0 : index
    %17 = vector.load %arg6[%c20, %c0_28] : memref<36x72xf32, #tpu.memory_space<vmem>>, vector<4x72xf32>
    tpu.vector_store %arg6[%c20, %c0_28], %16 {strides = array<i32>} : memref<36x72xf32, #tpu.memory_space<vmem>>, vector<4x72xf32>,
    %c0_29 = arith.constant 0 : index
    %c0_30 = arith.constant 0 : index
    %c0_31 = arith.constant 0 : index
    %c9 = arith.constant 9 : index
    %18 = vector.load %arg2[%c0_29, %c0_30, %c0_31, %c9] : memref<1x1x16x90xf32, #tpu.memory_space<vmem>>, vector<1x1x4x72xf32>
    %19 = vector.shape_cast %18 : vector<1x1x4x72xf32> to vector<4x72xf32>
    %c24 = arith.constant 24 : index
    %c0_32 = arith.constant 0 : index
    %20 = vector.load %arg6[%c24, %c0_32] : memref<36x72xf32, #tpu.memory_space<vmem>>, vector<4x72xf32>
    tpu.vector_store %arg6[%c24, %c0_32], %19 {strides = array<i32>} : memref<36x72xf32, #tpu.memory_space<vmem>>, vector<4x72xf32>,
    %c0_33 = arith.constant 0 : index
    %c0_34 = arith.constant 0 : index
    %c4_35 = arith.constant 4 : index
    %c9_36 = arith.constant 9 : index
    %21 = vector.load %arg2[%c0_33, %c0_34, %c4_35, %c9_36] : memref<1x1x16x90xf32, #tpu.memory_space<vmem>>, vector<1x1x4x72xf32>
    %22 = vector.shape_cast %21 : vector<1x1x4x72xf32> to vector<4x72xf32>
    %c28 = arith.constant 28 : index
    %c0_37 = arith.constant 0 : index
    %23 = vector.load %arg6[%c28, %c0_37] : memref<36x72xf32, #tpu.memory_space<vmem>>, vector<4x72xf32>
    tpu.vector_store %arg6[%c28, %c0_37], %22 {strides = array<i32>} : memref<36x72xf32, #tpu.memory_space<vmem>>, vector<4x72xf32>,
    %c0_38 = arith.constant 0 : index
    %c0_39 = arith.constant 0 : index
    %c0_40 = arith.constant 0 : index
    %c10 = arith.constant 10 : index
    %24 = vector.load %arg2[%c0_38, %c0_39, %c0_40, %c10] : memref<1x1x16x90xf32, #tpu.memory_space<vmem>>, vector<1x1x4x72xf32>
    %25 = vector.shape_cast %24 : vector<1x1x4x72xf32> to vector<4x72xf32>
    %c32 = arith.constant 32 : index
    %c0_41 = arith.constant 0 : index
    %26 = vector.load %arg6[%c32, %c0_41] : memref<36x72xf32, #tpu.memory_space<vmem>>, vector<4x72xf32>
    tpu.vector_store %arg6[%c32, %c0_41], %25 {strides = array<i32>} : memref<36x72xf32, #tpu.memory_space<vmem>>, vector<4x72xf32>,
    %c0_42 = arith.constant 0 : index
    %c0_43 = arith.constant 0 : index
    %27 = vector.load %arg3[%c0_42, %c0_43] : memref<8x36xf32, #tpu.memory_space<vmem>>, vector<8x36xf32>
    %c0_44 = arith.constant 0 : index
    %c0_45 = arith.constant 0 : index
    %28 = vector.load %arg6[%c0_44, %c0_45] : memref<36x72xf32, #tpu.memory_space<vmem>>, vector<36x72xf32>
    %cst = arith.constant dense<0.000000e+00> : vector<8x72xf32>
    %29 = tpu.matmul %27, %28, %cst {dimension_numbers = #tpu.dot_dimension_numbers<[1], [0], [0], [1], [0, 0, 1, 1], [], []>} : vector<8x36xf32>, vector<36x72xf32>, vector<8x72xf32> -> vector<8x72xf32>
    %c0_46 = arith.constant 0 : index
    %c0_47 = arith.constant 0 : index
    %30 = vector.load %arg4[%c0_46, %c0_47] : memref<8x1xf32, #tpu.memory_space<vmem>>, vector<8x1xf32>
    %31 = vector.broadcast %30 : vector<8x1xf32> to vector<8x72xf32>
    %32 = arith.addf %29, %31 : vector<8x72xf32>
    %cst_48 = arith.constant 0.000000e+00 : f32
    %33 = vector.broadcast %cst_48 : f32 to vector<8x72xf32>
    %34 = arith.maximumf %32, %33 : vector<8x72xf32>
    %c0_49 = arith.constant 0 : index
    %c0_50 = arith.constant 0 : index
    %c0_51 = arith.constant 0 : index
    %c0_52 = arith.constant 0 : index
    %35 = vector.load %arg5[%c0_49, %c0_50, %c0_51, %c0_52] : memref<1x1x8x72xf32, #tpu.memory_space<vmem>>, vector<1x1x8x72xf32>
    %36 = vector.shape_cast %35 : vector<1x1x8x72xf32> to vector<8x72xf32>
    %37 = vector.shape_cast %34 : vector<8x72xf32> to vector<1x1x8x72xf32>
    tpu.vector_store %arg5[%c0_49, %c0_50, %c0_51, %c0_52], %37 {strides = array<i32>} : memref<1x1x8x72xf32, #tpu.memory_space<vmem>>, vector<1x1x8x72xf32>,
    return
  }
  func.func @transform_0(%arg0: i32, %arg1: i32) -> (i32, i32, i32, i32) {
    %c0_i32 = arith.constant 0 : i32
    %c0_i32_0 = arith.constant 0 : i32
    %c0_i32_1 = arith.constant 0 : i32
    return %arg0, %arg1, %c0_i32, %c0_i32_0 : i32, i32, i32, i32
  }
  func.func @transform_1(%arg0: i32, %arg1: i32) -> (i32, i32) {
    %c0_i32 = arith.constant 0 : i32
    %c0_i32_0 = arith.constant 0 : i32
    %c0_i32_1 = arith.constant 0 : i32
    return %c0_i32, %c0_i32_0 : i32, i32
  }
  func.func @transform_2(%arg0: i32, %arg1: i32) -> (i32, i32) {
    %c0_i32 = arith.constant 0 : i32
    %c0_i32_0 = arith.constant 0 : i32
    %c0_i32_1 = arith.constant 0 : i32
    return %c0_i32, %c0_i32_0 : i32, i32
  }
  func.func @transform_3(%arg0: i32, %arg1: i32) -> (i32, i32, i32, i32) {
    %c0_i32 = arith.constant 0 : i32
    %c0_i32_0 = arith.constant 0 : i32
    %c0_i32_1 = arith.constant 0 : i32
    return %arg0, %arg1, %c0_i32, %c0_i32_0 : i32, i32, i32, i32
  }
}

</mosaic_0001>

<bundles_post_ra>
// kernel: pool_forward.1
= control target key start
LH: loop header
LB: loop body
LE: loop exit
PB: predicated region body
PF: predicated region fallthrough
CT: control target
= control target key end

     0   :  { %s456_s12 = smov 0   ;;  %s458_s13 = smov 0   ;;  %s508_s0 = inlined_call_operand.vmem [shape: f32[2,1,16,90], index: 0, kind: input, shape index: {}]   ;;  %s509_s1 = inlined_call_operand.vmem [shape: f32[8,36], index: 1, kind: input, shape index: {}]   ;;  %s510_s2 = inlined_call_operand.vmem [shape: f32[8,1], index: 2, kind: input, shape index: {}]   ;;  %s511_s3 = inlined_call_operand.vmem [shape: f32[2,1,8,72], index: 3, kind: output, shape index: {}]  }
   0x1   :  { %s460_s14 = smov 0  }
   0x2 LB: > { %s25_s15 = sadd.s32 1, %s426_s13  ;;  %p369_p0 = scmp.ge.s32.totalorder %s430_s14, 1  ;;  %s430_s14 = sphi %s460_s14, %s13_s14   ;;  %s426_s13 = sphi %s458_s13, %s513_s13   ;;  %s422_s12 = sphi %s456_s12, %s512_s12  }
   0x3   : > { %p27_p1 = scmp.ge.s32.totalorder %s25_s15, 2  ;;  %p157_p2 = scmp.lt.s32.totalorder %s430_s14, 3 }
   0x5   : > { %s515_s15 = smov (%p27_p1, %s25_s15), 0  ;;  %p158_p3 = pnand %p369_p0, %p157_p2 }
   0x6   : > { %p187_p4 = scmp.lt.s32.totalorder (!%p158_p3), %s422_s12, 1  ;;  %s432_s20 = smov (!%p158_p3), 118  }
   0x7   : > { %161 = sbr.rel (%p158_p3) target bundleno = 285 (0x11d), region = 32  ;;  %s433_s21 = smov (!%p158_p3), 119  }
   0x8   : > { %s434_s22 = smov (!%p158_p3), 127  }
   0xc   : > { %s517_s12 = smov (!%p187_p4, %s422_s12), 1  ;;  %vm204_vm0 = vcmask 584704   ;;  %v248_v10 = vld [vmem:[%s510_s2] sm:$0xff]  ;;  %v435_v11 = vmov 0   ;;  %vm258_vm1 = vcmask 1043456   ;;  %vm254_vm2 = vcmask 293888  }
   0xd   : > { %s377_s16 = sshll.u32 %s517_s12, 4  ;;  %406 = vset.pattern.permute.xlu2 %v435_v11  ;;  %407 = vset.pattern.permute.xlu0 %v435_v11  ;;  %v242_v21 = vld [vmem:[%s509_s1] sm:$0xff]  ;;  %s372_s27 = sshll.u32 %s517_s12, 3  ;;  %vm283_vm3 = vcmask 588800  }
   0xe   : > { %s195_s19 = scalar_lea.vmem %s508_s0, %s377_s16  ;;  %s202_s30 = scalar_lea.vmem %s511_s3, %s372_s27 }
   0xf   : > { %v236_v0 = vld [vmem:[%s195_s19] sm:$0xf]  ;;  %v230_v1 = vld [vmem:[%s195_s19 + $0x4] sm:$0xf]  ;;  %v218_v4 = vld [vmem:[%s195_s19 + $0x8] sm:$0xf] }
  0x10   : > { %238 = vrot.lane.b32.xlu0 %v236_v0, %s432_s20  ;;  %232 = vrot.lane.b32.xlu1 %v230_v1, %s433_s21  ;;  %v208_v2 = vld [vmem:[%s195_s19] sm:$0xf]  ;;  %v216_v6 = vld [vmem:[%s195_s19 + $0xc] sm:$0xf] }
  0x11   : > { %210 = vrot.lane.b32.xlu2 %v208_v2, %s434_s22  ;;  %v224_v3 = vld [vmem:[%s195_s19] sm:$0xf]  ;;  %217 = vst.msk [vmem:[#allocation2 + $0x10] sm:$0xf] %vm204_vm0, %v216_v6  ;;  %v214_v7 = vld [vmem:[%s195_s19 + $0x8] sm:$0xf] }
  0x12   : > { %215 = vst.msk [vmem:[#allocation2 + $0xc] sm:$0xf] %vm204_vm0, %v214_v7  ;;  %v203_v8 = vld [vmem:[%s195_s19] sm:$0xf]  ;;  %v206_v9 = vld [vmem:[%s195_s19 + $0x4] sm:$0xf] }
  0x13   : > { %205 = vst.msk [vmem:[#allocation2] sm:$0xf] %vm204_vm0, %v203_v8 }
  0x14   : > { %207 = vst.msk [vmem:[#allocation2 + $0x4] sm:$0xf] %vm204_vm0, %v206_v9 }
  0x18   : > { %226 = vrot.lane.b32.xlu0 %v224_v3, %s433_s21  ;;  %220 = vrot.lane.b32.xlu1 %v218_v4, %s434_s22 }
  0x19   : > { %251 = vperm.xlu2 %406, %v248_v10  }
  0x1b   : > { %v243_v20 = vld [vmem:[#allocation2] sm:$0xff] }
  0x6b   : > { %v211_v5 = vpop.permute.xlu2 %210 }
  0x6c   : > { %213 = vst.msk [vmem:[#allocation2 + $0x8] sm:$0xf] %vm204_vm0, %v211_v5 }
  0x73   : > { %v244_v19 = vld [vmem:[#allocation2 + $0x8] sm:$0xff]  ;;  %v252_v22 = vpop.permute.xlu2 %251 }
  0x82   : > { %v239_v12 = vpop.permute.xlu0 %238  ;;  %v233_v13 = vpop.permute.xlu1 %232 }
  0x83   : > { %241 = vst.msk [vmem:[#allocation2 + $0x20] sm:$0xf] %vm204_vm0, %v239_v12 }
  0x84   : > { %235 = vst.msk [vmem:[#allocation2 + $0x1c] sm:$0xf] %vm204_vm0, %v233_v13 }
  0x8a   : > { %v227_v14 = vpop.permute.xlu0 %226  ;;  %v247_v15 = vld [vmem:[#allocation2 + $0x20] sm:$0xf]  ;;  %v221_v16 = vpop.permute.xlu1 %220 }
  0x8b   : > { %229 = vst.msk [vmem:[#allocation2 + $0x18] sm:$0xf] %vm204_vm0, %v227_v14  ;;  %373 = vmatpush.msk.msra.mxu0 %vm258_vm1, %v247_v15 }
  0x8c   : > { %223 = vst.msk [vmem:[#allocation2 + $0x14] sm:$0xf] %vm204_vm0, %v221_v16 }
  0x92   : > { %v246_v17 = vld [vmem:[#allocation2 + $0x18] sm:$0xff] }
  0x93   : > { %274 = vmatpush.msra.mxu0 %v246_v17  ;;  %v245_v18 = vld [vmem:[#allocation2 + $0x10] sm:$0xff] }
  0x95   : > { %275 = vmatpush.msra.mxu0 %v245_v18 }
  0x97   : > { %276 = vmatpush.msra.mxu0 %v244_v19 }
  0x99   : > { %277 = vmatpush.msra.mxu0 %v243_v20 }
  0x9a   : > { %374 = vmatmul.msk.f32.vlgmr.msra.gmra.mxu0 %vm254_vm2, %v242_v21 }
 0x117   : > { %v279_v23 = vpop.f32.mrf.mxu0 }
 0x118   : > { %v280_v24 = vadd.f32 %v279_v23, %v252_v22 }
 0x11a   : > { %v282_v25 = vmax.f32 %v280_v24, 0.0 }
 0x11c   : > { %284 = vst.msk [vmem:[%s202_s30] sm:$0xff] %vm283_vm3, %v282_v25 }
 0x11d PF: > { %s13_s14 = sadd.s32 1, %s430_s14   ;;  %s512_s12 = smov %s426_s13 }
 0x11e   : > { %p10_p5 = scmp.ge.s32.totalorder %s13_s14, 4   ;;  %s513_s13 = smov %s515_s15 }
 0x120   :  { %12 = sbr.rel (!%p10_p5) target bundleno = 2 (0x2), region = 62 }

</bundles_post_ra>
